<compile_context>
chip_gen: v5e
topology: v5e:2x2
jax: 0.10.0
libtpu: 0.0.40
codegen_flags: <defaults>
</compile_context>

<pallas_src>
import functools

import jax
import jax.numpy as jnp
from jax import lax
from jax.experimental import pallas as pl
from jax.experimental.pallas import tpu as pltpu


def _round_up(x, m):
    return ((x + m - 1) // m) * m


def _contrastive_loss_kernel(e1_ref, e2_ref, lab_ref, out_ref, *,
                             margin, n_valid, tile_b):
    e1 = e1_ref[...]
    e2 = e2_ref[...]
    if e1.dtype != jnp.float32:
        e1 = e1.astype(jnp.float32)
    if e2.dtype != jnp.float32:
        e2 = e2.astype(jnp.float32)
    lab = lab_ref[...]                                   # (TILE_B, 1) f32

    # Three row reductions (lane-axis) instead of five.
    s11 = jnp.sum(e1 * e1, axis=1, keepdims=True)        # (TILE_B, 1)
    s22 = jnp.sum(e2 * e2, axis=1, keepdims=True)
    s12 = jnp.sum(e1 * e2, axis=1, keepdims=True)

    # F.normalize(eps=1e-12) clamp on the norm == clamp of squared norm at
    # 1e-24; rsqrt lowers to the EUP. Zero rows -> s12 == 0 -> sim == 0,
    # matching the PyTorch normalize + clamped cosine_similarity chain.
    inv1 = lax.rsqrt(jnp.maximum(s11, 1e-24))
    inv2 = lax.rsqrt(jnp.maximum(s22, 1e-24))
    sim = s12 * inv1 * inv2                              # (TILE_B, 1)

    pos = (1.0 - sim) * (1.0 - sim)
    clipped = jnp.maximum(sim - margin, 0.0)
    neg = clipped * clipped
    loss = jnp.where(lab > 0.5, pos, neg)                # (TILE_B, 1)

    # Mask rows that are only padding (when B was padded up to TILE_B).
    row = (pl.program_id(0) * tile_b
           + lax.broadcasted_iota(jnp.int32, (tile_b, 1), 0))
    loss = jnp.where(row < n_valid, loss, 0.0)

    # Lane-dense per-tile partial sum (unmasked vst), reduced in the wrapper.
    partial = jnp.sum(loss)
    out_ref[...] = jnp.full((1, 128), partial, dtype=jnp.float32)


def contrastive_loss(emb1, emb2, labels, margin=0.5, tile_b=None):
    """emb1, emb2: (B, D) float; labels: (B,) {0,1}. Returns scalar f32 loss."""
    B, D = emb1.shape

    if tile_b is None:
        # Keep 2 inputs x 2 pipeline buffers x TILE_B x D x 4 B under ~8 MiB.
        tile_b = max(8, min(2048, (8 << 20) // (16 * max(D, 1))))
    tile_b = _round_up(max(int(tile_b), 8), 8)
    tile_b = min(tile_b, _round_up(B, 8))

    B_pad = _round_up(B, tile_b)
    num_tiles = B_pad // tile_b

    labels_f = labels.reshape(B).astype(jnp.float32)
    if B_pad != B:
        pad = B_pad - B
        emb1 = jnp.pad(emb1, ((0, pad), (0, 0)))
        emb2 = jnp.pad(emb2, ((0, pad), (0, 0)))
        labels_f = jnp.pad(labels_f, (0, pad))
    labels2d = labels_f.reshape(B_pad, 1)

    kernel = functools.partial(
        _contrastive_loss_kernel,
        margin=float(margin), n_valid=B, tile_b=tile_b)

    partials = pl.pallas_call(
        kernel,
        out_shape=jax.ShapeDtypeStruct((num_tiles, 128), jnp.float32),
        grid_spec=pl.GridSpec(
            grid=(num_tiles,),
            in_specs=[
                pl.BlockSpec((tile_b, D), lambda i: (i, 0)),
                pl.BlockSpec((tile_b, D), lambda i: (i, 0)),
                pl.BlockSpec((tile_b, 1), lambda i: (i, 0)),
            ],
            out_specs=pl.BlockSpec((1, 128), lambda i: (i, 0)),
        ),
        compiler_params=pltpu.CompilerParams(
            dimension_semantics=("parallel",)),
    )(emb1, emb2, labels2d)

    # Final mean over the ORIGINAL batch size (padded rows contribute 0).
    return jnp.sum(partials[:, 0]) / B


def _ref_loss(e1, e2, y, margin=0.5):
    """Pure-JAX reference with the same semantics as the PyTorch forward."""
    e1n = e1 / jnp.maximum(jnp.linalg.norm(e1, axis=1, keepdims=True), 1e-12)
    e2n = e2 / jnp.maximum(jnp.linalg.norm(e2, axis=1, keepdims=True), 1e-12)
    dot = jnp.sum(e1n * e2n, axis=1)
    denom = jnp.maximum(
        jnp.linalg.norm(e1n, axis=1) * jnp.linalg.norm(e2n, axis=1), 1e-8)
    sim = dot / denom
    y = y.astype(jnp.float32)
    l = y * (1 - sim) ** 2 + (1 - y) * jnp.maximum(sim - margin, 0.0) ** 2
    return jnp.mean(l)


if __name__ == "__main__":
    key = jax.random.PRNGKey(0)
    k1, k2, k3, k4, k5, k6 = jax.random.split(key, 6)

    # Case 1: small embedding-pair batch (single tile).
    B, D = 8, 32
    emb1 = jax.random.normal(k1, (B, D), dtype=jnp.float32)
    emb2 = jax.random.normal(k2, (B, D), dtype=jnp.float32)
    labels = jax.random.bernoulli(k3, p=0.5, shape=(B,)).astype(jnp.int32)

    loss = contrastive_loss(emb1, emb2, labels, margin=0.5)
    jax.block_until_ready(loss)
    assert jnp.allclose(loss, _ref_loss(emb1, emb2, labels), atol=1e-5), (
        loss, _ref_loss(emb1, emb2, labels))

    # Case 2: exercises multi-tile grid + batch padding + row masking.
    B2, D2 = 300, 128
    e1b = jax.random.normal(k4, (B2, D2), dtype=jnp.float32)
    e2b = jax.random.normal(k5, (B2, D2), dtype=jnp.float32)
    labb = jax.random.bernoulli(k6, p=0.5, shape=(B2,)).astype(jnp.int32)

    loss2 = contrastive_loss(e1b, e2b, labb, margin=0.5, tile_b=128)
    jax.block_until_ready(loss2)
    assert jnp.allclose(loss2, _ref_loss(e1b, e2b, labb), atol=1e-5), (
        loss2, _ref_loss(e1b, e2b, labb))

    print("KERNEL_OK")
</pallas_src>

<mosaic_0001>
module attributes {stable_mosaic.version = 11 : i64} {
  func.func @_contrastive_loss_kernel(%arg0: i32, %arg1: memref<8x32xf32, #tpu.memory_space<vmem>>, %arg2: memref<8x32xf32, #tpu.memory_space<vmem>>, %arg3: memref<8x1xf32, #tpu.memory_space<vmem>>, %arg4: memref<1x128xf32, #tpu.memory_space<vmem>>) attributes {dimension_semantics = [#tpu.dimension_semantics<parallel>], iteration_bounds = array<i64: 1>, scalar_prefetch = 0 : i64, scratch_operands = 0 : i64, tpu.core_type = #tpu.core_type<tc>, window_params = [{transform_indices = @transform_0, window_bounds = array<i64: 8, 32>}, {transform_indices = @transform_1, window_bounds = array<i64: 8, 32>}, {transform_indices = @transform_2, window_bounds = array<i64: 8, 1>}, {transform_indices = @transform_3, window_bounds = array<i64: 1, 128>}]} {
    %c0 = arith.constant 0 : index
    %c0_0 = arith.constant 0 : index
    %0 = vector.load %arg1[%c0, %c0_0] : memref<8x32xf32, #tpu.memory_space<vmem>>, vector<8x32xf32>
    %c0_1 = arith.constant 0 : index
    %c0_2 = arith.constant 0 : index
    %1 = vector.load %arg2[%c0_1, %c0_2] : memref<8x32xf32, #tpu.memory_space<vmem>>, vector<8x32xf32>
    %c0_3 = arith.constant 0 : index
    %c0_4 = arith.constant 0 : index
    %2 = vector.load %arg3[%c0_3, %c0_4] : memref<8x1xf32, #tpu.memory_space<vmem>>, vector<8x1xf32>
    %3 = arith.mulf %0, %0 : vector<8x32xf32>
    %cst = arith.constant dense<0.000000e+00> : vector<8xf32>
    %4 = vector.multi_reduction <add>, %3, %cst [1] : vector<8x32xf32> to vector<8xf32>
    %5 = vector.shape_cast %4 : vector<8xf32> to vector<8x1xf32>
    %6 = arith.mulf %1, %1 : vector<8x32xf32>
    %cst_5 = arith.constant dense<0.000000e+00> : vector<8xf32>
    %7 = vector.multi_reduction <add>, %6, %cst_5 [1] : vector<8x32xf32> to vector<8xf32>
    %8 = vector.shape_cast %7 : vector<8xf32> to vector<8x1xf32>
    %9 = arith.mulf %0, %1 : vector<8x32xf32>
    %cst_6 = arith.constant dense<0.000000e+00> : vector<8xf32>
    %10 = vector.multi_reduction <add>, %9, %cst_6 [1] : vector<8x32xf32> to vector<8xf32>
    %11 = vector.shape_cast %10 : vector<8xf32> to vector<8x1xf32>
    %cst_7 = arith.constant 1.000000e-24 : f32
    %12 = vector.broadcast %cst_7 : f32 to vector<8x1xf32>
    %13 = arith.maximumf %5, %12 : vector<8x1xf32>
    %14 = math.rsqrt %13 : vector<8x1xf32>
    %cst_8 = arith.constant 1.000000e-24 : f32
    %15 = vector.broadcast %cst_8 : f32 to vector<8x1xf32>
    %16 = arith.maximumf %8, %15 : vector<8x1xf32>
    %17 = math.rsqrt %16 : vector<8x1xf32>
    %18 = arith.mulf %11, %14 : vector<8x1xf32>
    %19 = arith.mulf %18, %17 : vector<8x1xf32>
    %cst_9 = arith.constant 1.000000e+00 : f32
    %20 = vector.broadcast %cst_9 : f32 to vector<8x1xf32>
    %21 = arith.subf %20, %19 : vector<8x1xf32>
    %cst_10 = arith.constant 1.000000e+00 : f32
    %22 = vector.broadcast %cst_10 : f32 to vector<8x1xf32>
    %23 = arith.subf %22, %19 : vector<8x1xf32>
    %24 = arith.mulf %21, %23 : vector<8x1xf32>
    %cst_11 = arith.constant 5.000000e-01 : f32
    %25 = vector.broadcast %cst_11 : f32 to vector<8x1xf32>
    %26 = arith.subf %19, %25 : vector<8x1xf32>
    %cst_12 = arith.constant 0.000000e+00 : f32
    %27 = vector.broadcast %cst_12 : f32 to vector<8x1xf32>
    %28 = arith.maximumf %26, %27 : vector<8x1xf32>
    %29 = arith.mulf %28, %28 : vector<8x1xf32>
    %cst_13 = arith.constant 5.000000e-01 : f32
    %30 = vector.broadcast %cst_13 : f32 to vector<8x1xf32>
    %31 = arith.cmpf ogt, %2, %30 : vector<8x1xf32>
    %32 = arith.select %31, %24, %29 : vector<8x1xi1>, vector<8x1xf32>
    %c8_i32 = arith.constant 8 : i32
    %33 = arith.muli %arg0, %c8_i32 : i32
    %34 = tpu.iota {dimensions = array<i32: 0>} : vector<8x1xi32>
    %35 = vector.broadcast %33 : i32 to vector<8x1xi32>
    %36 = arith.addi %35, %34 : vector<8x1xi32>
    %c8_i32_14 = arith.constant 8 : i32
    %37 = vector.broadcast %c8_i32_14 : i32 to vector<8x1xi32>
    %38 = arith.cmpi slt, %36, %37 : vector<8x1xi32>
    %cst_15 = arith.constant 0.000000e+00 : f32
    %39 = vector.broadcast %cst_15 : f32 to vector<8x1xf32>
    %40 = arith.select %38, %32, %39 : vector<8x1xi1>, vector<8x1xf32>
    %41 = vector.shape_cast %40 : vector<8x1xf32> to vector<1x8x1xf32>
    %cst_16 = arith.constant dense<0.000000e+00> : vector<1xf32>
    %42 = vector.multi_reduction <add>, %41, %cst_16 [1, 2] : vector<1x8x1xf32> to vector<1xf32>
    %43 = vector.shape_cast %42 : vector<1xf32> to vector<1x1x1xf32>
    %44 = vector.extract %43[0, 0, 0] : f32 from vector<1x1x1xf32>
    %45 = vector.broadcast %44 : f32 to vector<1x128xf32>
    %c0_17 = arith.constant 0 : index
    %c0_18 = arith.constant 0 : index
    %46 = vector.load %arg4[%c0_17, %c0_18] : memref<1x128xf32, #tpu.memory_space<vmem>>, vector<1x128xf32>
    tpu.vector_store %arg4[%c0_17, %c0_18], %45 {strides = array<i32>} : memref<1x128xf32, #tpu.memory_space<vmem>>, vector<1x128xf32>,
    return
  }
  func.func @transform_0(%arg0: i32) -> (i32, i32) {
    %c0_i32 = arith.constant 0 : i32
    %c0_i32_0 = arith.constant 0 : i32
    return %arg0, %c0_i32 : i32, i32
  }
  func.func @transform_1(%arg0: i32) -> (i32, i32) {
    %c0_i32 = arith.constant 0 : i32
    %c0_i32_0 = arith.constant 0 : i32
    return %arg0, %c0_i32 : i32, i32
  }
  func.func @transform_2(%arg0: i32) -> (i32, i32) {
    %c0_i32 = arith.constant 0 : i32
    %c0_i32_0 = arith.constant 0 : i32
    return %arg0, %c0_i32 : i32, i32
  }
  func.func @transform_3(%arg0: i32) -> (i32, i32) {
    %c0_i32 = arith.constant 0 : i32
    %c0_i32_0 = arith.constant 0 : i32
    return %arg0, %c0_i32 : i32, i32
  }
}

</mosaic_0001>

<bundles_post_ra>
// kernel: tpu_custom_call.1
= control target key start
LH: loop header
LB: loop body
LE: loop exit
PB: predicated region body
PF: predicated region fallthrough
CT: control target
= control target key end

     0   :  { %8 = vsyncpa [#allocation3], 0  ;;  %s208_s0 = inlined_call_operand.vmem [shape: f32[8,32], index: 0, kind: input, shape index: {}]   ;;  %s209_s1 = inlined_call_operand.hbm [shape: f32[8,32], index: 1, kind: input, shape index: {}]   ;;  %s210_s2 = inlined_call_operand.vmem [shape: f32[8,1], index: 2, kind: input, shape index: {}]   ;;  %s211_s3 = inlined_call_operand.hbm [shape: f32[1,128], index: 3, kind: output, shape index: {}]  }
   0x1   :  { %9 = vsyncpa [#allocation4], 0  ;;  %s17_s14 = sshll.u32 %s209_s1, 4  ;;  %s174_s15 = smov [#allocation2]   ;;  %s18_s14 = int_to_ptr.hbm [resolvable:$true] %s17_s14 }
   0x2   :  { %s19_s16 = sshll.u32 %s174_s15, 4  ;;  %s20_s16 = int_to_ptr.vmem [resolvable:$true] %s19_s16 }
   0x3   :  { %22 = dma.hbm_to_vmem [thread:$0]  %s18_s14, 128, %s20_s16, [#allocation3]  }
   0x4   :  { %170 = dma.done.wait [#allocation3], 128  }
   0x5   :  { %171 = vsyncadd [#allocation3], 4294967168  ;;  %v29_v0 = vld [vmem:[%s208_s0] sm:$0xff]  ;;  %vm33_vm0 = vcmask 261120   ;;  %vm83_vm8 = vcmask 7168   ;;  %s175_s19 = smov [#allocation5]  }
   0x6   :  { %v30_v1 = vld [vmem:[#allocation2] sm:$0xff]  ;;  %v32_v2 = vmul.f32 %v29_v0, %v29_v0  ;;  %s101_s20 = sshll.u32 %s175_s19, 4  ;;  %s103_s22 = sshll.u32 %s211_s3, 4  ;;  %s102_s20 = int_to_ptr.vmem [resolvable:$true] %s101_s20  ;;  %s104_s22 = int_to_ptr.hbm [resolvable:$true] %s103_s22 }
   0x7   :  { %v41_v3 = vmul.f32 %v30_v1, %v29_v0  ;;  %v37_v6 = vmul.f32 %v30_v1, %v30_v1  ;;  %v31_v31 = vld [vmem:[%s210_s2] sm:$0xff] }
   0x8   :  { %v34_v4 = vsel %vm33_vm0, %v32_v2, 0.0  ;;  %vm74_vm7 = vcmp.gt.f32.partialorder %v31_v31, 0.5 }
   0x9   :  { %v42_v5 = vsel %vm33_vm0, %v41_v3, 0.0  ;;  %35 = vadd.xlane.f32.xlu0 %v34_v4  ;;  %v38_v7 = vsel %vm33_vm0, %v37_v6, 0.0 }
   0xa   :  { %43 = vadd.xlane.f32.xlu1 %v42_v5 }
  0x11   :  { %39 = vadd.xlane.f32.xlu0 %v38_v7 }
  0x7c   :  { %v36_v8 = vpop.xlane.xlu0 %35 }
  0x7d   :  { %v45_v9 = vmax.f32 %v36_v8, 1e-24  ;;  %v44_v23 = vpop.xlane.xlu1 %43 }
  0x7f   :  { %118 = vrsqrt.f32 %v45_v9  ;;  %vm52_vm2 = vweird.f32 %v45_v9 }
  0x84   :  { %v40_v10 = vpop.xlane.xlu0 %39 }
  0x85   :  { %v119_v11 = vpop.eup %118  ;;  %v56_v12 = vmax.f32 %v40_v10, 1e-24 }
  0x86   :  { %v47_v13 = vmul.f32 %v119_v11, %v45_v9  ;;  %vm53_vm1 = vweird.f32 %v119_v11 }
  0x87   :  { %120 = vrsqrt.f32 %v56_v12  ;;  %vm54_vm3 = vmor %vm52_vm2, %vm53_vm1  ;;  %vm63_vm5 = vweird.f32 %v56_v12 }
  0x88   :  { %v48_v14 = vmul.f32 %v119_v11, %v47_v13 }
  0x8a   :  { %v49_v15 = vmul.f32 0.5, %v48_v14 }
  0x8c   :  { %v50_v16 = vsub.f32 1.5, %v49_v15 }
  0x8d   :  { %v121_v17 = vpop.eup %120 }
  0x8e   :  { %v58_v18 = vmul.f32 %v121_v17, %v56_v12  ;;  %v51_v20 = vmul.f32 %v119_v11, %v50_v16  ;;  %vm64_vm4 = vweird.f32 %v121_v17 }
  0x8f   :  { %vm65_vm6 = vmor %vm63_vm5, %vm64_vm4 }
  0x90   :  { %v59_v19 = vmul.f32 %v121_v17, %v58_v18  ;;  %v55_v24 = vsel %vm54_vm3, %v119_v11, %v51_v20 }
  0x91   :  { %v67_v26 = vmul.f32 %v55_v24, %v44_v23 }
  0x92   :  { %v60_v21 = vmul.f32 0.5, %v59_v19 }
  0x94   :  { %v61_v22 = vsub.f32 1.5, %v60_v21 }
  0x96   :  { %v62_v25 = vmul.f32 %v121_v17, %v61_v22 }
  0x98   :  { %v66_v27 = vsel %vm65_vm6, %v121_v17, %v62_v25 }
  0x99   :  { %v68_v28 = vmul.f32 %v67_v26, %v66_v27 }
  0x9b   :  { %v69_v29 = vsub.f32 1.0, %v68_v28  ;;  %v113_v30 = vadd.f32 -0.5, %v68_v28 }
  0x9d   :  { %v72_v32 = vmax.f32 %v113_v30, 0.0  ;;  %v70_v33 = vmul.f32 %v69_v29, %v69_v29 }
  0x9f   :  { %v73_v34 = vmul.f32 %v72_v32, %v72_v32 }
  0xa1   :  { %v75_v35 = vsel %vm74_vm7, %v70_v33, %v73_v34 }
  0xa2   :  { %v84_v36 = vsel %vm83_vm8, %v75_v35, 0.0 }
  0xa3   :  { %85 = vadd.xlane.f32.xlu1 %v84_v36 }
 0x116   :  { %v86_v37 = vpop.xlane.xlu1 %85 }
 0x117   :  { %v87_v38 = vrot.slane %v86_v37, 4 }
 0x119   :  { %v88_v39 = vadd.f32 %v87_v38, %v86_v37 }
 0x11b   :  { %v89_v40 = vrot.slane %v88_v39, 2 }
 0x11d   :  { %v90_v41 = vadd.f32 %v89_v40, %v88_v39 }
 0x11f   :  { %v91_v42 = vrot.slane %v90_v41, 1 }
 0x121   :  { %v92_v43 = vadd.f32 %v91_v42, %v90_v41 }
 0x123   :  { %114 = vpush %v92_v43 }
 0x154   :  { %s115_s23 = spop %114 }
 0x155   :  { %v94_v44 = vstv %s115_s23 }
 0x156   :  { %95 = vst [vmem:[#allocation5] sm:$0x1] %v94_v44 }
 0x157   :  { %106 = dma.vmem_to_hbm [thread:$0]  %s102_s20, 16, %s104_s22, [#allocation4]  }
 0x158   :  { %172 = dma.done.wait [#allocation4], 16  }
 0x159   :  { %173 = vsyncadd [#allocation4], 4294967280 }
 0x15a   :  { %111 = vsyncpa [#allocation3], 1 }
 0x15b   :  { %112 = vsyncpa [#allocation4], 1 }

</bundles_post_ra>
